<compile_context>
chip_gen: v6e
topology: v6e:2x2x1
jax: 0.10.0
libtpu: 0.0.40
codegen_flags: <defaults>
</compile_context>

<pallas_src>
import jax
import jax.numpy as jnp
from jax import lax
from jax.experimental import pallas as pl
from jax.experimental.pallas import tpu as pltpu


def _round_up(x: int, m: int) -> int:
    return ((x + m - 1) // m) * m


def _choose_tile(n: int, gran: int, max_tile: int):
    """Pick (tile, n_pad, num_tiles): tile % gran == 0, tile <= max_tile, minimal padding.

    Guarantees n_pad - n < gran * num_tiles (at most one granule of waste per tile),
    instead of up to ~2x waste from round_up(n, max_tile).
    """
    max_tile = max((max_tile // gran) * gran, gran)
    n_g = _round_up(n, gran)
    num = -(-n_g // max_tile)                      # ceil: number of tiles
    tile = _round_up(-(-n // num), gran)           # smallest granule-aligned tile covering n
    return tile, num * tile, num


def _make_kernel(TN: int, TM: int):
    n_stripes = TN // 8
    n_chunks = TM // 128

    def kernel(xc_ref, xt_ref, out_ref, rowfold_ref, colfold_ref, best_ref):
        i = pl.program_id(0)          # row tile (outer, over Xc)
        j = pl.program_id(1)          # column tile (inner, over Xt)
        ni = pl.num_programs(0)
        nj = pl.num_programs(1)

        # ---- accumulator init ------------------------------------------------
        @pl.when(jnp.logical_and(i == 0, j == 0))
        def _():
            # Squared min-distances are >= 0, so 0 is the identity for the running max.
            best_ref[...] = jnp.zeros_like(best_ref)

        @pl.when(j == 0)
        def _():
            rowfold_ref[...] = jnp.full_like(rowfold_ref, jnp.inf)

        @pl.when(i == 0)
        def _():
            colfold_ref[j] = jnp.full((1, TM), jnp.inf, dtype=jnp.float32)

        # ---- fused distance + min-fold, one (8, 128) chunk at a time ---------
        # Per stripe of 8 Xc points: compute squared distances chunk-by-chunk and
        # immediately min-fold along Xt (row_acc, 1 vreg) and along Xc (sub_fold,
        # TM/128 vregs carried through the loop).  No (TN, TM) intermediate exists.
        def stripe_body(r, sub_fold):
            rm = pl.multiple_of(r * 8, 8)
            xc_stripe = xc_ref[pl.ds(rm, 8), :]          # (8, 2)
            cx = xc_stripe[:, 0:1]                       # (8, 1) -> lane broadcast
            cy = xc_stripe[:, 1:2]
            row_acc = None
            new_sub = []
            for c in range(n_chunks):
                sl = slice(c * 128, (c + 1) * 128)
                dx = cx - xt_ref[0:1, sl]                # (8, 128)
                dy = cy - xt_ref[1:2, sl]
                d2 = dx * dx + dy * dy                   # squared; sqrt deferred to scalar
                row_acc = d2 if row_acc is None else jnp.minimum(row_acc, d2)
                new_sub.append(jnp.minimum(sub_fold[c], d2))
            prev = rowfold_ref[pl.ds(rm, 8), :]          # (8, 128)
            rowfold_ref[pl.ds(rm, 8), :] = jnp.minimum(prev, row_acc)
            return tuple(new_sub)

        inf_chunk = jnp.full((8, 128), jnp.inf, dtype=jnp.float32)
        sub_fold = lax.fori_loop(0, n_stripes, stripe_body,
                                 tuple([inf_chunk] * n_chunks))

        # Collapse each chunk's 8 sublanes (XLU, free slot) before touching scratch:
        # colfold stays (1, TM) per column tile -> 8x less RMW traffic and scratch.
        col_parts = [jnp.min(sf, axis=0, keepdims=True) for sf in sub_fold]   # (1, 128) each
        col_tile = col_parts[0] if n_chunks == 1 else jnp.concatenate(col_parts, axis=1)
        new_col = jnp.minimum(colfold_ref[j], col_tile)                        # (1, TM)
        colfold_ref[j] = new_col

        # ---- per-row-tile epilogue after the last column tile -----------------
        @pl.when(j == nj - 1)
        def _():
            row_min = jnp.min(rowfold_ref[...], axis=1, keepdims=True)   # (TN, 1)
            tile_max = jnp.max(row_min, axis=0, keepdims=True)           # (1, 1)
            best_ref[...] = jnp.maximum(best_ref[...], tile_max)

        # ---- per-column-tile finalization spread over the last row of tiles ---
        @pl.when(i == ni - 1)
        def _():
            col_max = jnp.max(new_col, axis=1, keepdims=True)            # (1, 1)
            best_ref[...] = jnp.maximum(best_ref[...], col_max)

        # ---- final: single sqrt of the running max of squared mins ------------
        @pl.when(jnp.logical_and(i == ni - 1, j == nj - 1))
        def _():
            out_ref[...] = jnp.sqrt(best_ref[...])

    return kernel


def hausdorff_loss(Xc: jax.Array, Xt: jax.Array,
                   *, max_tn: int = 1024, max_tm: int = 2048) -> jax.Array:
    """Pallas TPU forward pass of HausdorffLoss.

    Xc: (N, 2), Xt: (M, 2). Returns a scalar float32 Hausdorff distance.
    """
    N = int(Xc.shape[0])
    M = int(Xt.shape[0])
    if N == 0 or M == 0:
        raise ValueError("HausdorffLoss requires non-empty point sets.")
    if Xc.shape[-1] != 2 or Xt.shape[-1] != 2:
        raise ValueError("Expected Xc of shape (N, 2) and Xt of shape (M, 2).")

    Xc = Xc.astype(jnp.float32)
    Xt = Xt.astype(jnp.float32)

    TN, N_pad, num_i = _choose_tile(N, 8, max_tn)
    TM, M_pad, num_j = _choose_tile(M, 128, max_tm)

    # Pad with duplicates of the first point: duplicated points change neither
    # directed Hausdorff term, so partial tiles need no in-kernel masking.
    if N_pad != N:
        Xc = jnp.concatenate([Xc, jnp.broadcast_to(Xc[:1], (N_pad - N, 2))], axis=0)
    if M_pad != M:
        Xt = jnp.concatenate([Xt, jnp.broadcast_to(Xt[:1], (M_pad - M, 2))], axis=0)

    # Xc packed sublane-major (N_pad, 2); Xt lane-major (2, M_pad): in-kernel
    # broadcasts are cheap splats and DMA traffic stays O(N + M).
    xc = Xc                  # (N_pad, 2)
    xt = Xt.T                # (2, M_pad)

    kernel = _make_kernel(TN, TM)

    out = pl.pallas_call(
        kernel,
        out_shape=jax.ShapeDtypeStruct((1, 1), jnp.float32),
        grid_spec=pltpu.PrefetchScalarGridSpec(
            num_scalar_prefetch=0,
            grid=(num_i, num_j),                          # column (Xt) axis innermost
            in_specs=[
                pl.BlockSpec((TN, 2), lambda i, j: (i, 0)),   # Xc coords
                pl.BlockSpec((2, TM), lambda i, j: (0, j)),   # Xt coords
            ],
            out_specs=pl.BlockSpec((1, 1), lambda i, j: (0, 0)),
            scratch_shapes=[
                pltpu.VMEM((TN, 128), jnp.float32),       # row-min fold (persists over j)
                pltpu.VMEM((num_j, 1, TM), jnp.float32),  # col-min folds (persist over i)
                pltpu.VMEM((1, 1), jnp.float32),          # running max of squared mins
            ],
        ),
        compiler_params=pltpu.CompilerParams(
            # Scratch accumulators persist across both grid axes, so both stay sequential.
            # TODO(synk): on v7x, shard the row-tile axis over the 2 TensorCores
            # (core-parallel leading axis) with per-core colfold/best partials and a
            # tiny max-combine outside the kernel.
            dimension_semantics=("arbitrary", "arbitrary"),
            vmem_limit_bytes=32 * 1024 * 1024,
        ),
    )(xc, xt)

    return out[0, 0]


def _hausdorff_ref(Xc, Xt):
    # Pure-JAX reference mirroring torch.cdist + min/min/max.
    diff = Xc[:, None, :] - Xt[None, :, :]
    dists = jnp.sqrt(jnp.sum(diff * diff, axis=-1))
    return jnp.maximum(jnp.max(jnp.min(dists, axis=1)),
                       jnp.max(jnp.min(dists, axis=0)))


if __name__ == "__main__":
    key = jax.random.PRNGKey(0)
    k1, k2, k3, k4, k5, k6 = jax.random.split(key, 6)

    # 1) Small curves, single-tile grid (like the module docstring example).
    Xc = jax.random.normal(k1, (16, 2), dtype=jnp.float32)
    Xt = jax.random.normal(k2, (32, 2), dtype=jnp.float32)
    loss = hausdorff_loss(Xc, Xt)
    jax.block_until_ready(loss)
    ref = _hausdorff_ref(Xc, Xt)
    assert jnp.allclose(loss, ref, rtol=1e-5, atol=1e-5), (loss, ref)

    # 2) Multi-tile + partial-tile path (forced tiny tiles): exercises the streaming
    #    row/col accumulators, duplicate-point padding, and per-tile epilogues.
    Xc2 = jax.random.normal(k3, (37, 2), dtype=jnp.float32)
    Xt2 = jax.random.normal(k4, (200, 2), dtype=jnp.float32)
    loss2 = hausdorff_loss(Xc2, Xt2, max_tn=16, max_tm=128)
    jax.block_until_ready(loss2)
    ref2 = _hausdorff_ref(Xc2, Xt2)
    assert jnp.allclose(loss2, ref2, rtol=1e-5, atol=1e-5), (loss2, ref2)

    # 3) Default tiles: multiple sublane stripes and lane chunks inside one grid step.
    Xc3 = jax.random.normal(k5, (120, 2), dtype=jnp.float32)
    Xt3 = jax.random.normal(k6, (260, 2), dtype=jnp.float32)
    loss3 = hausdorff_loss(Xc3, Xt3)
    jax.block_until_ready(loss3)
    ref3 = _hausdorff_ref(Xc3, Xt3)
    assert jnp.allclose(loss3, ref3, rtol=1e-5, atol=1e-5), (loss3, ref3)

    print("KERNEL_OK")
</pallas_src>

<mosaic_0001>
module attributes {stable_mosaic.version = 11 : i64} {
  func.func @kernel(%arg0: i32, %arg1: i32, %arg2: memref<16x2xf32, #tpu.memory_space<vmem>>, %arg3: memref<2x128xf32, #tpu.memory_space<vmem>>, %arg4: memref<1x1xf32, #tpu.memory_space<vmem>>, %arg5: memref<16x128xf32, #tpu.memory_space<vmem>>, %arg6: memref<1x1x128xf32, #tpu.memory_space<vmem>>, %arg7: memref<1x1xf32, #tpu.memory_space<vmem>>) attributes {dimension_semantics = [#tpu.dimension_semantics<arbitrary>, #tpu.dimension_semantics<arbitrary>], iteration_bounds = array<i64: 1, 1>, scalar_prefetch = 0 : i64, scratch_operands = 3 : i64, tpu.core_type = #tpu.core_type<tc>, window_params = [{transform_indices = @transform_0, window_bounds = array<i64: 16, 2>}, {transform_indices = @transform_1, window_bounds = array<i64: 2, 128>}, {pipeline_mode = #tpu.pipeline_mode<synchronous>, transform_indices = @transform_2, window_bounds = array<i64: 1, 1>}]} {
    %c0_i32 = arith.constant 0 : i32
    %0 = arith.cmpi eq, %arg0, %c0_i32 : i32
    %c0_i32_0 = arith.constant 0 : i32
    %1 = arith.cmpi eq, %arg1, %c0_i32_0 : i32
    %2 = arith.andi %0, %1 : i1
    %3 = arith.extui %2 : i1 to i32
    %c0_i32_1 = arith.constant 0 : i32
    %4 = arith.cmpi ne, %3, %c0_i32_1 : i32
    scf.if %4 {
      %cst_19 = arith.constant 0.000000e+00 : f32
      %35 = vector.broadcast %cst_19 : f32 to vector<1x1xf32>
      %c0_20 = arith.constant 0 : index
      %c0_21 = arith.constant 0 : index
      %36 = vector.load %arg7[%c0_20, %c0_21] : memref<1x1xf32, #tpu.memory_space<vmem>>, vector<1x1xf32>
      tpu.vector_store %arg7[%c0_20, %c0_21], %35 {strides = array<i32>} : memref<1x1xf32, #tpu.memory_space<vmem>>, vector<1x1xf32>,
    } else {
    }
    %c0_i32_2 = arith.constant 0 : i32
    %5 = arith.cmpi eq, %arg1, %c0_i32_2 : i32
    %6 = arith.extui %5 : i1 to i32
    %c0_i32_3 = arith.constant 0 : i32
    %7 = arith.cmpi ne, %6, %c0_i32_3 : i32
    scf.if %7 {
      %cst_19 = arith.constant 0x7F800000 : f32
      %35 = vector.broadcast %cst_19 : f32 to vector<16x128xf32>
      %c0_20 = arith.constant 0 : index
      %c0_21 = arith.constant 0 : index
      %36 = vector.load %arg5[%c0_20, %c0_21] : memref<16x128xf32, #tpu.memory_space<vmem>>, vector<16x128xf32>
      tpu.vector_store %arg5[%c0_20, %c0_21], %35 {strides = array<i32>} : memref<16x128xf32, #tpu.memory_space<vmem>>, vector<16x128xf32>,
    } else {
    }
    %c0_i32_4 = arith.constant 0 : i32
    %8 = arith.cmpi eq, %arg0, %c0_i32_4 : i32
    %9 = arith.extui %8 : i1 to i32
    %c0_i32_5 = arith.constant 0 : i32
    %10 = arith.cmpi ne, %9, %c0_i32_5 : i32
    scf.if %10 {
      %cst_19 = arith.constant 0x7F800000 : f32
      %35 = vector.broadcast %cst_19 : f32 to vector<1x128xf32>
      %36 = arith.index_cast %arg1 : i32 to index
      %c0_20 = arith.constant 0 : index
      %c0_21 = arith.constant 0 : index
      %37 = vector.load %arg6[%36, %c0_20, %c0_21] : memref<1x1x128xf32, #tpu.memory_space<vmem>>, vector<1x1x128xf32>
      %38 = vector.shape_cast %37 : vector<1x1x128xf32> to vector<1x128xf32>
      %39 = vector.shape_cast %35 : vector<1x128xf32> to vector<1x1x128xf32>
      tpu.vector_store %arg6[%36, %c0_20, %c0_21], %39 {strides = array<i32>} : memref<1x1x128xf32, #tpu.memory_space<vmem>>, vector<1x1x128xf32>,
    } else {
    }
    %cst = arith.constant 0x7F800000 : f32
    %11 = vector.broadcast %cst : f32 to vector<8x128xf32>
    %c0_i32_6 = arith.constant 0 : i32
    %c2_i32 = arith.constant 2 : i32
    %12 = arith.addi %c0_i32_6, %c2_i32 : i32
    %c1_i32 = arith.constant 1 : i32
    %13 = scf.for %arg8 = %c0_i32_6 to %12 step %c1_i32 iter_args(%arg9 = %11) -> (vector<8x128xf32>)  : i32 {
      %c8_i32 = arith.constant 8 : i32
      %35 = arith.muli %arg8, %c8_i32 : i32
      %36 = tpu.assume_multiple %35, 8 : i32
      %37 = arith.index_cast %36 : i32 to index
      %c0_19 = arith.constant 0 : index
      %38 = vector.load %arg2[%37, %c0_19] : memref<16x2xf32, #tpu.memory_space<vmem>>, vector<8x2xf32>
      %39 = vector.extract_strided_slice %38 {offsets = [0, 0], sizes = [8, 1], strides = [1, 1]} : vector<8x2xf32> to vector<8x1xf32>
      %40 = vector.extract_strided_slice %38 {offsets = [0, 1], sizes = [8, 1], strides = [1, 1]} : vector<8x2xf32> to vector<8x1xf32>
      %c0_20 = arith.constant 0 : index
      %c0_21 = arith.constant 0 : index
      %41 = vector.load %arg3[%c0_20, %c0_21] : memref<2x128xf32, #tpu.memory_space<vmem>>, vector<1x128xf32>
      %42 = vector.broadcast %39 : vector<8x1xf32> to vector<8x128xf32>
      %43 = vector.broadcast %41 : vector<1x128xf32> to vector<8x128xf32>
      %44 = arith.subf %42, %43 : vector<8x128xf32>
      %c1 = arith.constant 1 : index
      %c0_22 = arith.constant 0 : index
      %45 = vector.load %arg3[%c1, %c0_22] : memref<2x128xf32, #tpu.memory_space<vmem>>, vector<1x128xf32>
      %46 = vector.broadcast %40 : vector<8x1xf32> to vector<8x128xf32>
      %47 = vector.broadcast %45 : vector<1x128xf32> to vector<8x128xf32>
      %48 = arith.subf %46, %47 : vector<8x128xf32>
      %49 = arith.mulf %44, %44 : vector<8x128xf32>
      %50 = arith.mulf %48, %48 : vector<8x128xf32>
      %51 = arith.addf %49, %50 : vector<8x128xf32>
      %52 = arith.minimumf %arg9, %51 : vector<8x128xf32>
      %53 = arith.index_cast %36 : i32 to index
      %c0_23 = arith.constant 0 : index
      %54 = vector.load %arg5[%53, %c0_23] : memref<16x128xf32, #tpu.memory_space<vmem>>, vector<8x128xf32>
      %55 = arith.minimumf %54, %51 : vector<8x128xf32>
      %56 = arith.index_cast %36 : i32 to index
      %c0_24 = arith.constant 0 : index
      %57 = vector.load %arg5[%56, %c0_24] : memref<16x128xf32, #tpu.memory_space<vmem>>, vector<8x128xf32>
      tpu.vector_store %arg5[%56, %c0_24], %55 {strides = array<i32>} : memref<16x128xf32, #tpu.memory_space<vmem>>, vector<8x128xf32>,
      scf.yield %52 : vector<8x128xf32>
    }
    %c2_i32_7 = arith.constant 2 : i32
    %cst_8 = arith.constant dense<0x7F800000> : vector<128xf32>
    %14 = vector.multi_reduction <minimumf>, %13, %cst_8 [0] : vector<8x128xf32> to vector<128xf32>
    %15 = vector.shape_cast %14 : vector<128xf32> to vector<1x128xf32>
    %16 = arith.index_cast %arg1 : i32 to index
    %c0 = arith.constant 0 : index
    %c0_9 = arith.constant 0 : index
    %17 = vector.load %arg6[%16, %c0, %c0_9] : memref<1x1x128xf32, #tpu.memory_space<vmem>>, vector<1x1x128xf32>
    %18 = vector.shape_cast %17 : vector<1x1x128xf32> to vector<1x128xf32>
    %19 = arith.minimumf %18, %15 : vector<1x128xf32>
    %20 = arith.index_cast %arg1 : i32 to index
    %c0_10 = arith.constant 0 : index
    %c0_11 = arith.constant 0 : index
    %21 = vector.load %arg6[%20, %c0_10, %c0_11] : memref<1x1x128xf32, #tpu.memory_space<vmem>>, vector<1x1x128xf32>
    %22 = vector.shape_cast %21 : vector<1x1x128xf32> to vector<1x128xf32>
    %23 = vector.shape_cast %19 : vector<1x128xf32> to vector<1x1x128xf32>
    tpu.vector_store %arg6[%20, %c0_10, %c0_11], %23 {strides = array<i32>} : memref<1x1x128xf32, #tpu.memory_space<vmem>>, vector<1x1x128xf32>,
    %c0_i32_12 = arith.constant 0 : i32
    %24 = arith.cmpi eq, %arg1, %c0_i32_12 : i32
    %25 = arith.extui %24 : i1 to i32
    %c0_i32_13 = arith.constant 0 : i32
    %26 = arith.cmpi ne, %25, %c0_i32_13 : i32
    scf.if %26 {
      %c0_19 = arith.constant 0 : index
      %c0_20 = arith.constant 0 : index
      %35 = vector.load %arg5[%c0_19, %c0_20] : memref<16x128xf32, #tpu.memory_space<vmem>>, vector<16x128xf32>
      %cst_21 = arith.constant dense<0x7F800000> : vector<16xf32>
      %36 = vector.multi_reduction <minimumf>, %35, %cst_21 [1] : vector<16x128xf32> to vector<16xf32>
      %37 = vector.shape_cast %36 : vector<16xf32> to vector<16x1xf32>
      %cst_22 = arith.constant dense<0xFF800000> : vector<1xf32>
      %38 = vector.multi_reduction <maximumf>, %37, %cst_22 [0] : vector<16x1xf32> to vector<1xf32>
      %39 = vector.shape_cast %38 : vector<1xf32> to vector<1x1xf32>
      %c0_23 = arith.constant 0 : index
      %c0_24 = arith.constant 0 : index
      %40 = vector.load %arg7[%c0_23, %c0_24] : memref<1x1xf32, #tpu.memory_space<vmem>>, vector<1x1xf32>
      %41 = arith.maximumf %40, %39 : vector<1x1xf32>
      %c0_25 = arith.constant 0 : index
      %c0_26 = arith.constant 0 : index
      %42 = vector.load %arg7[%c0_25, %c0_26] : memref<1x1xf32, #tpu.memory_space<vmem>>, vector<1x1xf32>
      tpu.vector_store %arg7[%c0_25, %c0_26], %41 {strides = array<i32>} : memref<1x1xf32, #tpu.memory_space<vmem>>, vector<1x1xf32>,
    } else {
    }
    %c0_i32_14 = arith.constant 0 : i32
    %27 = arith.cmpi eq, %arg0, %c0_i32_14 : i32
    %28 = arith.extui %27 : i1 to i32
    %c0_i32_15 = arith.constant 0 : i32
    %29 = arith.cmpi ne, %28, %c0_i32_15 : i32
    scf.if %29 {
      %cst_19 = arith.constant dense<0xFF800000> : vector<1xf32>
      %35 = vector.multi_reduction <maximumf>, %19, %cst_19 [1] : vector<1x128xf32> to vector<1xf32>
      %36 = vector.shape_cast %35 : vector<1xf32> to vector<1x1xf32>
      %c0_20 = arith.constant 0 : index
      %c0_21 = arith.constant 0 : index
      %37 = vector.load %arg7[%c0_20, %c0_21] : memref<1x1xf32, #tpu.memory_space<vmem>>, vector<1x1xf32>
      %38 = arith.maximumf %37, %36 : vector<1x1xf32>
      %c0_22 = arith.constant 0 : index
      %c0_23 = arith.constant 0 : index
      %39 = vector.load %arg7[%c0_22, %c0_23] : memref<1x1xf32, #tpu.memory_space<vmem>>, vector<1x1xf32>
      tpu.vector_store %arg7[%c0_22, %c0_23], %38 {strides = array<i32>} : memref<1x1xf32, #tpu.memory_space<vmem>>, vector<1x1xf32>,
    } else {
    }
    %c0_i32_16 = arith.constant 0 : i32
    %30 = arith.cmpi eq, %arg0, %c0_i32_16 : i32
    %c0_i32_17 = arith.constant 0 : i32
    %31 = arith.cmpi eq, %arg1, %c0_i32_17 : i32
    %32 = arith.andi %30, %31 : i1
    %33 = arith.extui %32 : i1 to i32
    %c0_i32_18 = arith.constant 0 : i32
    %34 = arith.cmpi ne, %33, %c0_i32_18 : i32
    scf.if %34 {
      %c0_19 = arith.constant 0 : index
      %c0_20 = arith.constant 0 : index
      %35 = vector.load %arg7[%c0_19, %c0_20] : memref<1x1xf32, #tpu.memory_space<vmem>>, vector<1x1xf32>
      %36 = math.sqrt %35 : vector<1x1xf32>
      %c0_21 = arith.constant 0 : index
      %c0_22 = arith.constant 0 : index
      %37 = vector.load %arg4[%c0_21, %c0_22] : memref<1x1xf32, #tpu.memory_space<vmem>>, vector<1x1xf32>
      tpu.vector_store %arg4[%c0_21, %c0_22], %36 {strides = array<i32>} : memref<1x1xf32, #tpu.memory_space<vmem>>, vector<1x1xf32>,
    } else {
    }
    return
  }
  func.func @transform_0(%arg0: i32, %arg1: i32) -> (i32, i32) {
    %c0_i32 = arith.constant 0 : i32
    %c0_i32_0 = arith.constant 0 : i32
    return %arg0, %c0_i32 : i32, i32
  }
  func.func @transform_1(%arg0: i32, %arg1: i32) -> (i32, i32) {
    %c0_i32 = arith.constant 0 : i32
    %c0_i32_0 = arith.constant 0 : i32
    return %c0_i32, %arg1 : i32, i32
  }
  func.func @transform_2(%arg0: i32, %arg1: i32) -> (i32, i32) {
    %c0_i32 = arith.constant 0 : i32
    %c0_i32_0 = arith.constant 0 : i32
    %c0_i32_1 = arith.constant 0 : i32
    return %c0_i32, %c0_i32_0 : i32, i32
  }
}

</mosaic_0001>

<bundles_post_ra>
// kernel: tpu_custom_call.1
= control target key start
LH: loop header
LB: loop body
LE: loop exit
PB: predicated region body
PF: predicated region fallthrough
CT: control target
= control target key end

     0   :  { %7 = vsyncpa [#allocation6], 0  ;;  %vm18_vm0 = vcmask 0   ;;  %v212_v0 = vmov 0.0   ;;  %v213_v1 = vmov inf   ;;  %v204_v2 = vmov inf   ;;  %s253_s0 = inlined_call_operand.vmem [shape: f32[16,2], index: 0, kind: input, shape index: {}]   ;;  %s254_s1 = inlined_call_operand.vmem [shape: f32[2,128], index: 1, kind: input, shape index: {}]   ;;  %s255_s2 = inlined_call_operand.hbm [shape: f32[1,1], index: 2, kind: output, shape index: {}]  }
   0x1   :  { %19 = vst.msk [vmem:[#allocation4] sm:$0x1] %vm18_vm0, %v212_v0  ;;  %23 = vst [vmem:[#allocation2] sm:$0xff] %v213_v1  ;;  %s233_s9 = smov 0  }
   0x2   :  { %24 = vst [vmem:[#allocation2 + $0x8] sm:$0xff] %v213_v1  ;;  %28 = vst [vmem:[#allocation3] sm:$0x1] %v213_v1 }
   0x3 LB: > { %v214_v3 = vmov 0   ;;  %s146_s10 = sshll.u32 %s210_s9, 3  ;;  %v215_v5 = vmov 1   ;;  %v147_v7 = vld [vmem:[%s254_s1] ss:$0 sm:$0xff]  ;;  %s34_s9 = sadd.s32 1, %s210_s9   ;;  %s210_s9 = sphi %s233_s9, %s34_s9   ;;  %v206_v2 = vphi %v204_v2, %v205_v2  }
   0x4   : > { %170 = vset.pattern.permute.xlu0 %v214_v3  ;;  %s37_s13 = scalar_lea.vmem %s253_s0, %s146_s10  ;;  %v148_v8 = vld [vmem:[%s254_s1 + $0x1] ss:$0 sm:$0xff]  ;;  %s64_s18 = scalar_lea.vmem [#allocation2], %s146_s10 }
   0x5   : > { %v38_v4 = vld [vmem:[%s37_s13] sm:$0xff]  ;;  %p31_p0 = scmp.ge.s32.totalorder %s34_s9, 2  }
   0x6   : > { %42 = vperm.xlu0 %170, %v38_v4   ;;  %vm100_vm1 = vcmask (%p31_p0), 1040384   ;;  %s216_s0 = smov (%p31_p0), [#allocation5]  }
   0x7   :  { %s126_s1 = sshll.u32 (%p31_p0), %s216_s0, 4  ;;  %s127_s1 = int_to_ptr.vmem [resolvable:$true] %s126_s1 }
   0x8   :  { %v93_v37 = vld [vmem:[#allocation4] sm:$0x1] (%p31_p0)  ;;  %s174_s19 = scalar_lea.vmem (%p31_p0), %s127_s1, 16  ;;  %s178_s20 = scalar_lea.vmem (%p31_p0), %s127_s1, 32 }
   0x9   : > { %v65_v14 = vld [vmem:[%s64_s18] sm:$0xff]  ;;  %v74_v25 = vld [vmem:[#allocation3] sm:$0x1] (%p31_p0)  ;;  %p175_p1 = scmp.ne.s32.totalorder (%p31_p0), %s127_s1, %s174_s19  ;;  %p179_p2 = scmp.lt.s32.totalorder (%p31_p0), %s127_s1, %s127_s1 }
   0xa   : > { %171 = vset.pattern.permute.xlu0 %v215_v5  ;;  %p180_p3 = scmp.lt.s32.totalorder (%p31_p0), %s178_s20, %s174_s19 }
   0xb   : > { %52 = vperm.xlu0 %171, %v38_v4  }
   0xc   :  { %p181_p4 = por (%p31_p0), %p180_p3, %p179_p2 }
   0xe   :  { %p182_p5 = pnand (%p31_p0), %p181_p4, %p175_p1 }
  0x81   : > { %v43_v6 = vpop.permute.xlu0 %42 }
  0x82   : > { %v49_v9 = vsub.f32 %v43_v6, %v147_v7 }
  0x84   : > { %v60_v12 = vmul.f32 %v49_v9, %v49_v9 }
  0x86   : > { %v53_v10 = vpop.permute.xlu0 %52 }
  0x87   : > { %v59_v11 = vsub.f32 %v53_v10, %v148_v8 }
  0x89   : > { %v61_v13 = vmul.f32 %v59_v11, %v59_v11 }
  0x8b   : > { %v62_v15 = vadd.f32 %v61_v13, %v60_v12  ;;  %33 = sbr.rel (!%p31_p0) target bundleno = 3 (0x3), region = 61 }
  0x8d   : > { %v63_v16 = vmin.f32 %v206_v2, %v62_v15   ;;  %v66_v17 = vmin.f32 %v65_v14, %v62_v15 }
  0x8f   : > { %67 = vst [vmem:[%s64_s18] sm:$0xff] %v66_v17  ;;  %v205_v2 = vmov %v63_v16   ;;  %v68_v19 = vrot.slane (%p31_p0), %v63_v16, 4 }
  0x91   :  { %v69_v21 = vmin.f32 %v63_v16, %v68_v19 }
  0x93   :  { %v70_v22 = vrot.slane %v69_v21, 2 }
  0x95   :  { %v71_v23 = vmin.f32 %v69_v21, %v70_v22 }
  0x96   :  { %v80_v18 = vld [vmem:[#allocation2] sm:$0xff]  ;;  %v81_v20 = vld [vmem:[#allocation2 + $0x8] sm:$0xff] }
  0x97   :  { %82 = vmin.xlane.f32.xlu0 %v80_v18  ;;  %v72_v24 = vrot.slane %v71_v23, 1 }
  0x99   :  { %v73_v26 = vmin.f32 %v71_v23, %v72_v24 }
  0x9b   :  { %84 = vmin.xlane.f32.xlu0 %v81_v20  ;;  %v75_v27 = vmin.f32 %v74_v25, %v73_v26 }
  0x9d   :  { %v101_v28 = vsel %vm100_vm1, %v75_v27, -inf  ;;  %76 = vst [vmem:[#allocation3] sm:$0x1] %v75_v27 }
  0x9e   :  { %102 = vmax.xlane.f32.xlu1 %v101_v28 }
 0x120   :  { %v83_v29 = vpop.xlane.xlu0 %82 }
 0x124   :  { %v85_v30 = vpop.xlane.xlu0 %84 }
 0x125   :  { %v86_v31 = vmax.f32 %v83_v29, %v85_v30 }
 0x127   :  { %v87_v32 = vrot.slane %v86_v31, 4  ;;  %v103_v40 = vpop.xlane.xlu1 %102 }
 0x129   :  { %v88_v33 = vmax.f32 %v86_v31, %v87_v32 }
 0x12b   :  { %v89_v34 = vrot.slane %v88_v33, 2 }
 0x12d   :  { %v90_v35 = vmax.f32 %v88_v33, %v89_v34 }
 0x12f   :  { %v91_v36 = vrot.slane %v90_v35, 1 }
 0x131   :  { %v92_v38 = vmax.f32 %v90_v35, %v91_v36 }
 0x133   :  { %v94_v39 = vmax.f32 %v93_v37, %v92_v38 }
 0x135   :  { %96 = vst.msk [vmem:[#allocation4] sm:$0x1] %vm18_vm0, %v94_v39 }
 0x13c   :  { %v104_v41 = vld [vmem:[#allocation4] sm:$0x1] }
 0x13d   :  { %v105_v42 = vmax.f32 %v104_v41, %v103_v40 }
 0x13f   :  { %107 = vst.msk [vmem:[#allocation4] sm:$0x1] %vm18_vm0, %v105_v42 }
 0x146   :  { %v110_v43 = vld [vmem:[#allocation4] sm:$0x1] }
 0x147   :  { %172 = vrsqrt.f32 %v110_v43  ;;  %vm113_vm2 = vcmp.eq.f32.partialorder %v110_v43, inf  ;;  %v116_v46 = vand.u32 2147483648, %v110_v43  ;;  %vm115_vm3 = vcmp.eq.f32.partialorder %v110_v43, 0.0 }
 0x154   :  { %v173_v44 = vpop.eup %172 }
 0x155   :  { %v112_v45 = vmul.f32 %v173_v44, %v110_v43 }
 0x157   :  { %v114_v47 = vsel %vm113_vm2, %v110_v43, %v112_v45 }
 0x158   :  { %v117_v48 = vsel %vm115_vm3, %v116_v46, %v114_v47 }
 0x159   :  { %119 = vst.msk [vmem:[#allocation5] sm:$0x1] %vm18_vm0, %v117_v48 }
 0x15a   :  { %185 = shalt.err (!%p182_p5)
}
 0x15b   :  { %129 = dma.vmem_to_hbm [thread:$0]  %s127_s1, 16, %s255_s2, [#allocation6]  }
 0x15c   :  { %202 = dma.done.wait [#allocation6], 16  }
 0x15d   :  { %203 = vsyncadd [#allocation6], 4294967280 }
 0x15e   :  { %133 = vsyncpa [#allocation6], 1 }

</bundles_post_ra>
